<compile_context>
chip_gen: v5e
topology: v5e:2x2
jax: 0.10.0
libtpu: 0.0.40
codegen_flags: <defaults>
</compile_context>

<pallas_src>
import functools

import jax
import jax.numpy as jnp
from jax import lax
from jax.experimental import pallas as pl
from jax.experimental.pallas import tpu as pltpu


def _round_up(x, m):
    return (x + m - 1) // m * m


def _f1_double_soft_kernel(yp_ref, yt_ref, cost_ref,
                           tp_acc, sp_acc, st_acc,
                           *, batch_size, tile_b, batch_steps):
    """Grid = (label_tiles, batch_tiles); batch (reduction) axis is last."""
    bi = pl.program_id(1)
    tile_n = yp_ref.shape[1]

    @pl.when(bi == 0)
    def _init():
        tp_acc[...] = jnp.zeros_like(tp_acc)
        sp_acc[...] = jnp.zeros_like(sp_acc)
        st_acc[...] = jnp.zeros_like(st_acc)

    def accumulate(n_full, n_partial):
        """n_full full 8-row chunks + one chunk with n_partial (<8) valid rows.

        tp/sp/st are carried in vregs; the VMEM scratch accumulators are
        touched exactly once per grid step (one load + one store each).
        """
        zero = jnp.zeros((8, tile_n), jnp.float32)
        carry = (zero, zero, zero)

        def chunk(r, c):
            tp, sp, st = c
            off = pl.multiple_of(r * 8, 8)
            yp = yp_ref[pl.ds(off, 8), :].astype(jnp.float32)
            yt = yt_ref[pl.ds(off, 8), :].astype(jnp.float32)
            return tp + yp * yt, sp + yp, st + yt

        if n_full > 0:
            carry = lax.fori_loop(0, n_full, chunk, carry,
                                  unroll=min(n_full, 8))

        if n_partial > 0:
            off = n_full * 8                     # static
            yp = yp_ref[pl.ds(off, 8), :].astype(jnp.float32)
            yt = yt_ref[pl.ds(off, 8), :].astype(jnp.float32)
            row = lax.broadcasted_iota(jnp.int32, (8, tile_n), 0)
            valid = row < n_partial              # mask garbage (OOB) batch rows
            yp = jnp.where(valid, yp, 0.0)
            yt = jnp.where(valid, yt, 0.0)
            tp, sp, st = carry
            carry = (tp + yp * yt, sp + yp, st + yt)

        tp, sp, st = carry
        tp_acc[...] += tp
        sp_acc[...] += sp
        st_acc[...] += st

    full_chunks = tile_b // 8
    # Rows of the *real* (unpadded) array covered by the last batch step.
    tail_rows = batch_size - (batch_steps - 1) * tile_b    # static, 1..tile_b

    if tail_rows == tile_b:
        # Batch divides the tile exactly: single unmasked code path.
        accumulate(full_chunks, 0)
    else:
        if batch_steps > 1:
            @pl.when(bi < batch_steps - 1)
            def _body_full():
                accumulate(full_chunks, 0)

        @pl.when(bi == batch_steps - 1)
        def _body_tail():
            accumulate(tail_rows // 8, tail_rows % 8)

    @pl.when(bi == batch_steps - 1)
    def _epilogue():
        # Three small cross-sublane (XLU) reductions, once per label tile.
        tp = jnp.sum(tp_acc[...], axis=0, keepdims=True)   # (1, tile_n)
        sp = jnp.sum(sp_acc[...], axis=0, keepdims=True)
        st = jnp.sum(st_acc[...], axis=0, keepdims=True)

        eps = jnp.float32(1e-16)
        b_f = jnp.float32(batch_size)          # true (unpadded) batch size
        # fp = sp - tp ; fn = st - tp ; tn = B - sp - st + tp
        #   2*tp + fn + fp = sp + st
        #   2*tn + fn + fp = 2*B - sp - st
        tn = b_f - sp - st + tp
        soft_f1_class1 = 2.0 * tp / (sp + st + eps)
        soft_f1_class0 = 2.0 * tn / (2.0 * b_f - sp - st + eps)
        cost = 1.0 - 0.5 * (soft_f1_class1 + soft_f1_class0)
        cost_ref[...] = cost.astype(cost_ref.dtype)


def f1_double_soft_loss(y_pred_prob, y_true, reduction="mean",
                        *, label_tile=512, batch_tile=1024):
    """Pallas equivalent of F1DoubleSoftLoss(reduction)(y_pred_prob, y_true).

    y_pred_prob, y_true: arrays of shape (BATCH, N_LABELS).
    reduction: 'mean' -> scalar, 'none' -> per-label cost of shape (N_LABELS,).
    """
    assert y_pred_prob.shape == y_true.shape and y_pred_prob.ndim == 2
    assert reduction in ("mean", "none")
    b, n = y_pred_prob.shape

    if y_true.dtype == jnp.bool_:
        y_true = y_true.astype(y_pred_prob.dtype)

    # Normalize user tile args: lanes multiple of 128, sublanes multiple of 8.
    label_tile = max(128, _round_up(label_tile, 128))
    batch_tile = max(8, _round_up(batch_tile, 8))

    n128 = _round_up(n, 128)
    tile_n = min(label_tile, n128)
    # v7x megacore: give the "parallel" label axis >= 2 blocks when N allows.
    if pl.cdiv(n, tile_n) < 2 and n128 >= 256:
        tile_n = max(128, _round_up(pl.cdiv(n128, 2), 128))

    tile_b = min(batch_tile, _round_up(b, 8))

    # Keep the double-buffered input footprint v7x-safe (64 MiB VMEM chips).
    itemsize = max(jnp.dtype(y_pred_prob.dtype).itemsize,
                   jnp.dtype(y_true.dtype).itemsize)
    max_input_buffer_bytes = 24 << 20
    while 4 * tile_b * tile_n * itemsize > max_input_buffer_bytes and tile_b > 8:
        tile_b = max(8, _round_up(tile_b // 2, 8))

    batch_steps = pl.cdiv(b, tile_b)
    label_steps = pl.cdiv(n, tile_n)
    grid = (label_steps, batch_steps)

    # Output is allocated padded to whole label tiles (tiny) so every cost
    # store is a full, unmasked lane-dense block; real labels sliced below.
    out_cols = label_steps * tile_n

    vmem_bytes = int(2 * 2 * tile_b * tile_n * itemsize     # 2 inputs x 2 buffers
                     + 2 * 1 * tile_n * 4                   # output block (x2 buf)
                     + 3 * 8 * tile_n * 4                   # scratch accumulators
                     + (2 << 20))                           # headroom
    vmem_bytes = max(vmem_bytes, 8 << 20)

    kernel = functools.partial(_f1_double_soft_kernel,
                               batch_size=b, tile_b=tile_b,
                               batch_steps=batch_steps)

    cost = pl.pallas_call(
        kernel,
        out_shape=jax.ShapeDtypeStruct((1, out_cols), jnp.float32),
        grid_spec=pltpu.PrefetchScalarGridSpec(
            num_scalar_prefetch=0,
            grid=grid,
            in_specs=[
                pl.BlockSpec((tile_b, tile_n), lambda j, bj: (bj, j)),
                pl.BlockSpec((tile_b, tile_n), lambda j, bj: (bj, j)),
            ],
            out_specs=pl.BlockSpec((1, tile_n), lambda j, bj: (0, j)),
            scratch_shapes=[pltpu.VMEM((8, tile_n), jnp.float32)] * 3,
        ),
        compiler_params=pltpu.CompilerParams(
            dimension_semantics=("parallel", "arbitrary"),
            vmem_limit_bytes=vmem_bytes,
        ),
    )(y_pred_prob, y_true)

    cost = cost[0, :n]          # drop padded / garbage label lanes
    if reduction == "none":
        return cost
    # Macro mean over the real labels (tiny; stays in the wrapper).
    return cost.mean()


def _reference(y_pred_prob, y_true, reduction="mean"):
    """Pure-JAX reference matching the PyTorch module."""
    yp = y_pred_prob.astype(jnp.float32)
    yt = y_true.astype(jnp.float32)
    tp = (yp * yt).sum(axis=0)
    fp = (yp * (1 - yt)).sum(axis=0)
    fn = ((1 - yp) * yt).sum(axis=0)
    tn = ((1 - yp) * (1 - yt)).sum(axis=0)
    f1_1 = 2 * tp / (2 * tp + fn + fp + 1e-16)
    f1_0 = 2 * tn / (2 * tn + fn + fp + 1e-16)
    cost = 0.5 * ((1 - f1_1) + (1 - f1_0))
    if reduction == "none":
        return cost
    return cost.mean()


if __name__ == "__main__":
    key = jax.random.PRNGKey(0)
    k1, k2, k3, k4 = jax.random.split(key, 4)

    # Small shapes consistent with the module: (BATCH, N_LABELS).
    BATCH, N_LABELS = 8, 16
    y_pred_prob = jax.random.uniform(k1, (BATCH, N_LABELS), dtype=jnp.float32)
    y_true = (jax.random.uniform(k2, (BATCH, N_LABELS)) > 0.5).astype(jnp.float32)

    out_mean = f1_double_soft_loss(y_pred_prob, y_true, reduction="mean")
    out_none = f1_double_soft_loss(y_pred_prob, y_true, reduction="none")
    jax.block_until_ready((out_mean, out_none))

    ref_mean = _reference(y_pred_prob, y_true, "mean")
    ref_none = _reference(y_pred_prob, y_true, "none")
    assert jnp.allclose(out_mean, ref_mean, atol=1e-5, rtol=1e-5), (out_mean, ref_mean)
    assert jnp.allclose(out_none, ref_none, atol=1e-5, rtol=1e-5), (out_none, ref_none)

    # Non-8-aligned batch exercises the in-kernel tail row mask (no jnp.pad).
    B2, N2 = 13, 16
    yp2 = jax.random.uniform(k3, (B2, N2), dtype=jnp.float32)
    yt2 = (jax.random.uniform(k4, (B2, N2)) > 0.5).astype(jnp.float32)
    out2 = f1_double_soft_loss(yp2, yt2, reduction="mean")
    jax.block_until_ready(out2)
    assert jnp.allclose(out2, _reference(yp2, yt2, "mean"), atol=1e-5, rtol=1e-5), out2

    print("KERNEL_OK")
</pallas_src>

<mosaic_0001>
module attributes {stable_mosaic.version = 11 : i64} {
  func.func @_f1_double_soft_kernel(%arg0: i32, %arg1: i32, %arg2: memref<8x128xf32, #tpu.memory_space<vmem>>, %arg3: memref<8x128xf32, #tpu.memory_space<vmem>>, %arg4: memref<1x128xf32, #tpu.memory_space<vmem>>, %arg5: memref<8x128xf32, #tpu.memory_space<vmem>>, %arg6: memref<8x128xf32, #tpu.memory_space<vmem>>, %arg7: memref<8x128xf32, #tpu.memory_space<vmem>>) attributes {dimension_semantics = [#tpu.dimension_semantics<parallel>, #tpu.dimension_semantics<arbitrary>], iteration_bounds = array<i64: 1, 1>, scalar_prefetch = 0 : i64, scratch_operands = 3 : i64, tpu.core_type = #tpu.core_type<tc>, window_params = [{transform_indices = @transform_0, window_bounds = array<i64: 8, 128>}, {transform_indices = @transform_1, window_bounds = array<i64: 8, 128>}, {transform_indices = @transform_2, window_bounds = array<i64: 1, 128>}]} {
    %c0_i32 = arith.constant 0 : i32
    %0 = arith.cmpi eq, %arg1, %c0_i32 : i32
    %1 = arith.extui %0 : i1 to i32
    %c0_i32_0 = arith.constant 0 : i32
    %2 = arith.cmpi ne, %1, %c0_i32_0 : i32
    scf.if %2 {
      %cst_17 = arith.constant 0.000000e+00 : f32
      %26 = vector.broadcast %cst_17 : f32 to vector<8x128xf32>
      %c0_18 = arith.constant 0 : index
      %c0_19 = arith.constant 0 : index
      %27 = vector.load %arg5[%c0_18, %c0_19] : memref<8x128xf32, #tpu.memory_space<vmem>>, vector<8x128xf32>
      tpu.vector_store %arg5[%c0_18, %c0_19], %26 {strides = array<i32>} : memref<8x128xf32, #tpu.memory_space<vmem>>, vector<8x128xf32>,
      %cst_20 = arith.constant 0.000000e+00 : f32
      %28 = vector.broadcast %cst_20 : f32 to vector<8x128xf32>
      %c0_21 = arith.constant 0 : index
      %c0_22 = arith.constant 0 : index
      %29 = vector.load %arg6[%c0_21, %c0_22] : memref<8x128xf32, #tpu.memory_space<vmem>>, vector<8x128xf32>
      tpu.vector_store %arg6[%c0_21, %c0_22], %28 {strides = array<i32>} : memref<8x128xf32, #tpu.memory_space<vmem>>, vector<8x128xf32>,
      %cst_23 = arith.constant 0.000000e+00 : f32
      %30 = vector.broadcast %cst_23 : f32 to vector<8x128xf32>
      %c0_24 = arith.constant 0 : index
      %c0_25 = arith.constant 0 : index
      %31 = vector.load %arg7[%c0_24, %c0_25] : memref<8x128xf32, #tpu.memory_space<vmem>>, vector<8x128xf32>
      tpu.vector_store %arg7[%c0_24, %c0_25], %30 {strides = array<i32>} : memref<8x128xf32, #tpu.memory_space<vmem>>, vector<8x128xf32>,
    } else {
    }
    %cst = arith.constant 0.000000e+00 : f32
    %3 = vector.broadcast %cst : f32 to vector<8x128xf32>
    %c0_i32_1 = arith.constant 0 : i32
    %c8_i32 = arith.constant 8 : i32
    %4 = arith.muli %c0_i32_1, %c8_i32 : i32
    %5 = tpu.assume_multiple %4, 8 : i32
    %6 = arith.index_cast %5 : i32 to index
    %c0 = arith.constant 0 : index
    %7 = vector.load %arg2[%6, %c0] : memref<8x128xf32, #tpu.memory_space<vmem>>, vector<8x128xf32>
    %8 = arith.index_cast %5 : i32 to index
    %c0_2 = arith.constant 0 : index
    %9 = vector.load %arg3[%8, %c0_2] : memref<8x128xf32, #tpu.memory_space<vmem>>, vector<8x128xf32>
    %10 = arith.mulf %7, %9 : vector<8x128xf32>
    %11 = arith.addf %3, %10 : vector<8x128xf32>
    %12 = arith.addf %3, %7 : vector<8x128xf32>
    %13 = arith.addf %3, %9 : vector<8x128xf32>
    %c1_i32 = arith.constant 1 : i32
    %c0_3 = arith.constant 0 : index
    %c0_4 = arith.constant 0 : index
    %14 = vector.load %arg5[%c0_3, %c0_4] : memref<8x128xf32, #tpu.memory_space<vmem>>, vector<8x128xf32>
    %15 = arith.addf %14, %11 : vector<8x128xf32>
    %c0_5 = arith.constant 0 : index
    %c0_6 = arith.constant 0 : index
    %16 = vector.load %arg5[%c0_5, %c0_6] : memref<8x128xf32, #tpu.memory_space<vmem>>, vector<8x128xf32>
    tpu.vector_store %arg5[%c0_5, %c0_6], %15 {strides = array<i32>} : memref<8x128xf32, #tpu.memory_space<vmem>>, vector<8x128xf32>,
    %c0_7 = arith.constant 0 : index
    %c0_8 = arith.constant 0 : index
    %17 = vector.load %arg6[%c0_7, %c0_8] : memref<8x128xf32, #tpu.memory_space<vmem>>, vector<8x128xf32>
    %18 = arith.addf %17, %12 : vector<8x128xf32>
    %c0_9 = arith.constant 0 : index
    %c0_10 = arith.constant 0 : index
    %19 = vector.load %arg6[%c0_9, %c0_10] : memref<8x128xf32, #tpu.memory_space<vmem>>, vector<8x128xf32>
    tpu.vector_store %arg6[%c0_9, %c0_10], %18 {strides = array<i32>} : memref<8x128xf32, #tpu.memory_space<vmem>>, vector<8x128xf32>,
    %c0_11 = arith.constant 0 : index
    %c0_12 = arith.constant 0 : index
    %20 = vector.load %arg7[%c0_11, %c0_12] : memref<8x128xf32, #tpu.memory_space<vmem>>, vector<8x128xf32>
    %21 = arith.addf %20, %13 : vector<8x128xf32>
    %c0_13 = arith.constant 0 : index
    %c0_14 = arith.constant 0 : index
    %22 = vector.load %arg7[%c0_13, %c0_14] : memref<8x128xf32, #tpu.memory_space<vmem>>, vector<8x128xf32>
    tpu.vector_store %arg7[%c0_13, %c0_14], %21 {strides = array<i32>} : memref<8x128xf32, #tpu.memory_space<vmem>>, vector<8x128xf32>,
    %c0_i32_15 = arith.constant 0 : i32
    %23 = arith.cmpi eq, %arg1, %c0_i32_15 : i32
    %24 = arith.extui %23 : i1 to i32
    %c0_i32_16 = arith.constant 0 : i32
    %25 = arith.cmpi ne, %24, %c0_i32_16 : i32
    scf.if %25 {
      %c0_17 = arith.constant 0 : index
      %c0_18 = arith.constant 0 : index
      %26 = vector.load %arg5[%c0_17, %c0_18] : memref<8x128xf32, #tpu.memory_space<vmem>>, vector<8x128xf32>
      %cst_19 = arith.constant dense<0.000000e+00> : vector<128xf32>
      %27 = vector.multi_reduction <add>, %26, %cst_19 [0] : vector<8x128xf32> to vector<128xf32>
      %28 = vector.shape_cast %27 : vector<128xf32> to vector<1x128xf32>
      %c0_20 = arith.constant 0 : index
      %c0_21 = arith.constant 0 : index
      %29 = vector.load %arg6[%c0_20, %c0_21] : memref<8x128xf32, #tpu.memory_space<vmem>>, vector<8x128xf32>
      %cst_22 = arith.constant dense<0.000000e+00> : vector<128xf32>
      %30 = vector.multi_reduction <add>, %29, %cst_22 [0] : vector<8x128xf32> to vector<128xf32>
      %31 = vector.shape_cast %30 : vector<128xf32> to vector<1x128xf32>
      %c0_23 = arith.constant 0 : index
      %c0_24 = arith.constant 0 : index
      %32 = vector.load %arg7[%c0_23, %c0_24] : memref<8x128xf32, #tpu.memory_space<vmem>>, vector<8x128xf32>
      %cst_25 = arith.constant dense<0.000000e+00> : vector<128xf32>
      %33 = vector.multi_reduction <add>, %32, %cst_25 [0] : vector<8x128xf32> to vector<128xf32>
      %34 = vector.shape_cast %33 : vector<128xf32> to vector<1x128xf32>
      %cst_26 = arith.constant 8.000000e+00 : f32
      %35 = vector.broadcast %cst_26 : f32 to vector<1x128xf32>
      %36 = arith.subf %35, %31 : vector<1x128xf32>
      %37 = arith.subf %36, %34 : vector<1x128xf32>
      %38 = arith.addf %37, %28 : vector<1x128xf32>
      %cst_27 = arith.constant 2.000000e+00 : f32
      %39 = vector.broadcast %cst_27 : f32 to vector<1x128xf32>
      %40 = arith.mulf %39, %28 : vector<1x128xf32>
      %41 = arith.addf %31, %34 : vector<1x128xf32>
      %cst_28 = arith.constant 1.000000e-16 : f32
      %42 = vector.broadcast %cst_28 : f32 to vector<1x128xf32>
      %43 = arith.addf %41, %42 : vector<1x128xf32>
      %44 = arith.divf %40, %43 : vector<1x128xf32>
      %cst_29 = arith.constant 2.000000e+00 : f32
      %45 = vector.broadcast %cst_29 : f32 to vector<1x128xf32>
      %46 = arith.mulf %45, %38 : vector<1x128xf32>
      %cst_30 = arith.constant 2.000000e+00 : f32
      %cst_31 = arith.constant 8.000000e+00 : f32
      %47 = arith.mulf %cst_30, %cst_31 : f32
      %48 = vector.broadcast %47 : f32 to vector<1x128xf32>
      %49 = arith.subf %48, %31 : vector<1x128xf32>
      %50 = arith.subf %49, %34 : vector<1x128xf32>
      %cst_32 = arith.constant 1.000000e-16 : f32
      %51 = vector.broadcast %cst_32 : f32 to vector<1x128xf32>
      %52 = arith.addf %50, %51 : vector<1x128xf32>
      %53 = arith.divf %46, %52 : vector<1x128xf32>
      %54 = arith.addf %44, %53 : vector<1x128xf32>
      %cst_33 = arith.constant 5.000000e-01 : f32
      %55 = vector.broadcast %cst_33 : f32 to vector<1x128xf32>
      %56 = arith.mulf %55, %54 : vector<1x128xf32>
      %cst_34 = arith.constant 1.000000e+00 : f32
      %57 = vector.broadcast %cst_34 : f32 to vector<1x128xf32>
      %58 = arith.subf %57, %56 : vector<1x128xf32>
      %c0_35 = arith.constant 0 : index
      %c0_36 = arith.constant 0 : index
      %59 = vector.load %arg4[%c0_35, %c0_36] : memref<1x128xf32, #tpu.memory_space<vmem>>, vector<1x128xf32>
      tpu.vector_store %arg4[%c0_35, %c0_36], %58 {strides = array<i32>} : memref<1x128xf32, #tpu.memory_space<vmem>>, vector<1x128xf32>,
    } else {
    }
    return
  }
  func.func @transform_0(%arg0: i32, %arg1: i32) -> (i32, i32) {
    %c0_i32 = arith.constant 0 : i32
    return %arg1, %arg0 : i32, i32
  }
  func.func @transform_1(%arg0: i32, %arg1: i32) -> (i32, i32) {
    %c0_i32 = arith.constant 0 : i32
    return %arg1, %arg0 : i32, i32
  }
  func.func @transform_2(%arg0: i32, %arg1: i32) -> (i32, i32) {
    %c0_i32 = arith.constant 0 : i32
    %c0_i32_0 = arith.constant 0 : i32
    return %c0_i32, %arg0 : i32, i32
  }
}

</mosaic_0001>

<bundles_post_ra>
// kernel: tpu_custom_call.1
= control target key start
LH: loop header
LB: loop body
LE: loop exit
PB: predicated region body
PF: predicated region fallthrough
CT: control target
= control target key end

     0   :  { %7 = vsyncpa [#allocation6], 0  ;;  %s260_s0 = inlined_call_operand.hbm [shape: f32[8,16], index: 0, kind: input, shape index: {}]   ;;  %s261_s1 = inlined_call_operand.hbm [shape: f32[8,16], index: 1, kind: input, shape index: {}]   ;;  %s262_s2 = inlined_call_operand.hbm [shape: f32[1,128], index: 2, kind: output, shape index: {}]  }
   0x1   :  { %8 = vsyncpa [#allocation9], 0 }
   0x2   :  { %9 = vsyncpa [#allocation7], 0  ;;  %s15_s11 = sshll.u32 %s260_s0, 4  ;;  %s233_s12 = smov [#allocation5]   ;;  %s16_s11 = int_to_ptr.hbm [resolvable:$true] %s15_s11 }
   0x3   :  { %s17_s13 = sshll.u32 %s233_s12, 4  ;;  %s26_s16 = sshll.u32 %s261_s1, 4  ;;  %s18_s13 = int_to_ptr.vmem [resolvable:$true] %s17_s13  ;;  %s27_s16 = int_to_ptr.hbm [resolvable:$true] %s26_s16 }
   0x4   :  { %20 = dma.hbm_to_vmem [thread:$0]  %s16_s11, 128, %s18_s13, [#allocation6]  }
   0x5   :  { %s234_s17 = smov [#allocation8]  }
   0x6   :  { %s28_s18 = sshll.u32 %s234_s17, 4  ;;  %s29_s18 = int_to_ptr.vmem [resolvable:$true] %s28_s18 }
   0x7   :  { %31 = dma.hbm_to_vmem [thread:$0]  %s27_s16, 128, %s29_s18, [#allocation9]  }
   0x8   :  { %227 = dma.done.wait [#allocation6], 128  }
   0x9   :  { %228 = vsyncadd [#allocation6], 4294967168 }
   0xa   :  { %229 = dma.done.wait [#allocation9], 128  }
   0xb   :  { %230 = vsyncadd [#allocation9], 4294967168  ;;  %v47_v0 = vld [vmem:[#allocation5] sm:$0xff]  ;;  %v48_v1 = vld [vmem:[#allocation8] sm:$0xff]  ;;  %s235_s0 = smov [#allocation10]   ;;  %s137_s21 = sshll.u32 %s262_s2, 4  ;;  %s138_s21 = int_to_ptr.hbm [resolvable:$true] %s137_s21 }
   0xc   :  { %v49_v2 = vmul.f32 %v48_v1, %v47_v0  ;;  %v73_v3 = vrot.slane %v47_v0, 4  ;;  %v80_v4 = vrot.slane %v48_v1, 4  ;;  %s135_s1 = sshll.u32 %s235_s0, 4  ;;  %s136_s1 = int_to_ptr.vmem [resolvable:$true] %s135_s1 }
   0xe   :  { %v74_v5 = vadd.f32 %v73_v3, %v47_v0  ;;  %v81_v6 = vadd.f32 %v80_v4, %v48_v1  ;;  %v66_v7 = vrot.slane %v49_v2, 4 }
  0x10   :  { %v75_v8 = vrot.slane %v74_v5, 2  ;;  %v82_v9 = vrot.slane %v81_v6, 2  ;;  %v67_v12 = vadd.f32 %v66_v7, %v49_v2 }
  0x12   :  { %v76_v10 = vadd.f32 %v75_v8, %v74_v5  ;;  %v83_v11 = vadd.f32 %v82_v9, %v81_v6  ;;  %v68_v17 = vrot.slane %v67_v12, 2 }
  0x14   :  { %v77_v13 = vrot.slane %v76_v10, 1  ;;  %v84_v14 = vrot.slane %v83_v11, 1  ;;  %v69_v22 = vadd.f32 %v68_v17, %v67_v12 }
  0x16   :  { %v78_v15 = vadd.f32 %v77_v13, %v76_v10  ;;  %v85_v16 = vadd.f32 %v84_v14, %v83_v11  ;;  %v70_v24 = vrot.slane %v69_v22, 1 }
  0x18   :  { %v90_v18 = vadd.f32 %v85_v16, %v78_v15  ;;  %v108_v19 = vsub.f32 16.0, %v78_v15  ;;  %v86_v25 = vsub.f32 8.0, %v78_v15  ;;  %v71_v27 = vadd.f32 %v70_v24, %v69_v22 }
  0x1a   :  { %v91_v20 = vadd.f32 1e-16, %v90_v18  ;;  %v109_v21 = vsub.f32 %v108_v19, %v85_v16  ;;  %v87_v28 = vsub.f32 %v86_v25, %v85_v16  ;;  %v89_v42 = vmul.f32 2.0, %v71_v27 }
  0x1c   :  { %151 = vrcp.f32 %v91_v20  ;;  %v110_v23 = vadd.f32 1e-16, %v109_v21  ;;  %v103_v30 = vand.u32 2147483648, %v91_v20  ;;  %vm97_vm0 = vweird.f32 %v91_v20 }
  0x1d   :  { %v101_v33 = vand.u32 2147483647, %v91_v20  ;;  %v88_v35 = vadd.f32 %v87_v28, %v71_v27 }
  0x1e   :  { %153 = vrcp.f32 %v110_v23  ;;  %v104_v37 = vor.u32 1.1754944e-38, %v103_v30  ;;  %v122_v38 = vand.u32 2147483648, %v110_v23  ;;  %vm116_vm3 = vweird.f32 %v110_v23 }
  0x1f   :  { %v120_v40 = vand.u32 2147483647, %v110_v23  ;;  %vm102_vm5 = vcmp.eq.f32.partialorder %v101_v33, 8.507059e+37  ;;  %v107_v47 = vmul.f32 2.0, %v88_v35 }
  0x20   :  { %v123_v45 = vor.u32 1.1754944e-38, %v122_v38 }
  0x21   :  { %vm121_vm7 = vcmp.eq.f32.partialorder %v120_v40, 8.507059e+37 }
  0x22   :  { %v152_v26 = vpop.eup %151 }
  0x23   :  { %v93_v29 = vmul.f32 %v152_v26, %v91_v20  ;;  %vm98_vm1 = vweird.f32 %v152_v26 }
  0x24   :  { %v154_v31 = vpop.eup %153  ;;  %vm99_vm2 = vmor %vm97_vm0, %vm98_vm1 }
  0x25   :  { %v94_v32 = vsub.f32 1.0, %v93_v29  ;;  %v112_v34 = vmul.f32 %v154_v31, %v110_v23  ;;  %vm117_vm4 = vweird.f32 %v154_v31 }
  0x26   :  { %vm118_vm6 = vmor %vm116_vm3, %vm117_vm4 }
  0x27   :  { %v95_v36 = vmul.f32 %v152_v26, %v94_v32  ;;  %v113_v39 = vsub.f32 1.0, %v112_v34 }
  0x29   :  { %v96_v41 = vadd.f32 %v152_v26, %v95_v36  ;;  %v114_v43 = vmul.f32 %v154_v31, %v113_v39 }
  0x2b   :  { %v100_v44 = vsel %vm99_vm2, %v152_v26, %v96_v41  ;;  %v115_v48 = vadd.f32 %v154_v31, %v114_v43 }
  0x2c   :  { %v105_v46 = vsel %vm102_vm5, %v104_v37, %v100_v44 }
  0x2d   :  { %v106_v49 = vmul.f32 %v105_v46, %v89_v42  ;;  %v119_v50 = vsel %vm118_vm6, %v154_v31, %v115_v48 }
  0x2e   :  { %v124_v51 = vsel %vm121_vm7, %v123_v45, %v119_v50 }
  0x2f   :  { %v125_v52 = vmul.f32 %v124_v51, %v107_v47 }
  0x31   :  { %v126_v53 = vadd.f32 %v125_v52, %v106_v49 }
  0x33   :  { %v127_v54 = vmul.f32 0.5, %v126_v53 }
  0x35   :  { %v128_v55 = vsub.f32 1.0, %v127_v54 }
  0x37   :  { %129 = vst [vmem:[#allocation10] sm:$0x1] %v128_v55 }
  0x38   :  { %140 = dma.vmem_to_hbm [thread:$0]  %s136_s1, 16, %s138_s21, [#allocation7]  }
  0x39   :  { %231 = dma.done.wait [#allocation7], 16  }
  0x3a   :  { %232 = vsyncadd [#allocation7], 4294967280 }
  0x3b   :  { %145 = vsyncpa [#allocation6], 1 }
  0x3c   :  { %146 = vsyncpa [#allocation9], 1 }
  0x3d   :  { %147 = vsyncpa [#allocation7], 1 }

</bundles_post_ra>
